<compile_context>
chip_gen: v5e
topology: v5e:2x2
jax: 0.10.0
libtpu: 0.0.40
codegen_flags: <defaults>
</compile_context>

<pallas_src>
import jax
import jax.numpy as jnp
from jax.experimental import pallas as pl
from jax.experimental.pallas import tpu as pltpu


def _round_up(v, m):
    return ((v + m - 1) // m) * m


def _encoder_kernel(x_ref, wt_ref, p_ref, o_ref):
    # x_ref:  (TM, Fp)  bf16 tile of flattened inputs
    # wt_ref: (Fp, Ep)  bf16 transposed weight (resident across the grid)
    # p_ref:  (8,  Ep)  f32 packed per-channel params:
    #                    row 0 = linear bias
    #                    row 1 = fused BN scale  = gamma * rsqrt(var + eps)
    #                    row 2 = fused BN shift  = beta - mean * scale
    # o_ref:  (TM, Ep)  f32 output tile
    y = jnp.dot(x_ref[...], wt_ref[...], preferred_element_type=jnp.float32)
    y = y + p_ref[0:1, :]                         # linear bias
    y = jnp.maximum(y, 0.0)                       # ReLU
    y = y * p_ref[1:2, :] + p_ref[2:3, :]         # eval-mode BatchNorm1d
    o_ref[...] = y.astype(o_ref.dtype)


def point_cloud_encoder_forward(x, w, b, gamma, beta, running_mean,
                                running_var, *, tm=512, eps=1e-5):
    """x: (B, K, F) float32; w: (E, F); b/gamma/beta/mean/var: (E,).
       Returns (B, K, E) float32."""
    B, K, F = x.shape
    E = w.shape[0]
    M = B * K

    # Lane-dense padding: last dims to multiples of 128.
    Fp = _round_up(F, 128)
    Ep = _round_up(E, 128)

    # Row tile: as large as requested, but never larger than the (8-aligned)
    # row count, and shrunk if the double-buffered working set would blow a
    # conservative VMEM budget (sized so the same choice fits v7x's 64 MiB).
    tm_eff = max(8, min(_round_up(tm, 8), _round_up(M, 8)))

    def _working_set_bytes(t):
        return (2 * t * Fp * 2        # double-buffered bf16 x tiles
                + 2 * t * Ep * 4      # double-buffered f32 output tiles
                + Fp * Ep * 2         # resident bf16 weight
                + 8 * Ep * 4)         # packed bias / BN scale / BN shift

    budget = 40 * (1 << 20)
    while tm_eff > 8 and _working_set_bytes(tm_eff) > budget:
        tm_eff -= 8

    Mp = _round_up(M, tm_eff)

    # Flatten + zero-pad; bf16 feeds the MXU, accumulation stays f32.
    x_flat = x.reshape(M, F)
    x_flat = jnp.pad(x_flat, ((0, Mp - M), (0, Fp - F))).astype(jnp.bfloat16)
    # NOTE: for a real inference path, pre-store the weight as (Fp, Ep) bf16
    # once (this transpose/pad const-folds under jit with fixed weights).
    wt = jnp.pad(w.T, ((0, Fp - F), (0, Ep - E))).astype(jnp.bfloat16)

    # Fold eval-mode BatchNorm1d into per-channel scale/shift (computed once)
    # and pack bias/scale/shift into a single (8, Ep) f32 operand.
    scale = gamma * jax.lax.rsqrt(running_var + eps)
    shift = beta - running_mean * scale
    params = jnp.zeros((8, Ep), jnp.float32)
    params = params.at[0, :E].set(b.astype(jnp.float32))
    params = params.at[1, :E].set(scale.astype(jnp.float32))
    params = params.at[2, :E].set(shift.astype(jnp.float32))

    vmem_limit = int(min(max(2 * _working_set_bytes(tm_eff), 16 * (1 << 20)),
                         48 * (1 << 20)))

    out_flat = pl.pallas_call(
        _encoder_kernel,
        out_shape=jax.ShapeDtypeStruct((Mp, Ep), jnp.float32),
        grid_spec=pltpu.PrefetchScalarGridSpec(
            num_scalar_prefetch=0,
            grid=(Mp // tm_eff,),
            in_specs=[
                pl.BlockSpec((tm_eff, Fp), lambda i: (i, 0)),   # x tile
                pl.BlockSpec((Fp, Ep), lambda i: (0, 0)),       # W^T (resident)
                pl.BlockSpec((8, Ep), lambda i: (0, 0)),        # packed params
            ],
            out_specs=pl.BlockSpec((tm_eff, Ep), lambda i: (i, 0)),
        ),
        compiler_params=pltpu.CompilerParams(
            dimension_semantics=("parallel",),
            vmem_limit_bytes=vmem_limit),
    )(x_flat, wt, params)

    return out_flat[:M, :E].reshape(B, K, E)


def _reference(x, w, b, gamma, beta, mean, var):
    y = jnp.einsum("bkf,ef->bke", x, w) + b
    y = jnp.maximum(y, 0.0)
    inv_std = 1.0 / jnp.sqrt(var + 1e-5)
    return (y - mean) * inv_std * gamma + beta


if __name__ == "__main__":
    # Small shapes consistent with the module: pretrained feature dim F=1024
    # (Pointnet feat_dims), projection embed_size E, B geometries x K items.
    B, K, F, E = 2, 4, 1024, 128

    key = jax.random.PRNGKey(0)
    kx, kw, kb, kg, kbe, km, kv = jax.random.split(key, 7)

    x = jax.random.normal(kx, (B, K, F), dtype=jnp.float32)

    # Deterministic "pretrained + projection" parameters (synthetic).
    w = jax.random.normal(kw, (E, F), dtype=jnp.float32) * 0.05   # nn.Linear weight (out, in)
    b = jax.random.normal(kb, (E,), dtype=jnp.float32) * 0.05     # nn.Linear bias
    gamma = 1.0 + 0.1 * jax.random.normal(kg, (E,), dtype=jnp.float32)
    beta = 0.1 * jax.random.normal(kbe, (E,), dtype=jnp.float32)
    running_mean = 0.1 * jax.random.normal(km, (E,), dtype=jnp.float32)
    running_var = jnp.abs(1.0 + 0.1 * jax.random.normal(kv, (E,), dtype=jnp.float32))

    out = point_cloud_encoder_forward(x, w, b, gamma, beta,
                                      running_mean, running_var)
    out = jax.block_until_ready(out)

    ref = _reference(x, w, b, gamma, beta, running_mean, running_var)
    assert out.shape == (B, K, E)
    # bf16 inputs/weights with f32 accumulation -> loosened tolerance.
    assert jnp.allclose(out, ref, atol=5e-2, rtol=5e-2), float(
        jnp.max(jnp.abs(out - ref)))

    print("KERNEL_OK")
</pallas_src>

<mosaic_0001>
module attributes {stable_mosaic.version = 11 : i64} {
  func.func @_encoder_kernel(%arg0: i32, %arg1: memref<8x1024xbf16, #tpu.memory_space<vmem>>, %arg2: memref<1024x128xbf16, #tpu.memory_space<vmem>>, %arg3: memref<8x128xf32, #tpu.memory_space<vmem>>, %arg4: memref<8x128xf32, #tpu.memory_space<vmem>>) attributes {dimension_semantics = [#tpu.dimension_semantics<parallel>], iteration_bounds = array<i64: 1>, scalar_prefetch = 0 : i64, scratch_operands = 0 : i64, tpu.core_type = #tpu.core_type<tc>, window_params = [{transform_indices = @transform_0, window_bounds = array<i64: 8, 1024>}, {pipeline_mode = #tpu.pipeline_mode<synchronous>, transform_indices = @transform_1, window_bounds = array<i64: 1024, 128>}, {pipeline_mode = #tpu.pipeline_mode<synchronous>, transform_indices = @transform_2, window_bounds = array<i64: 8, 128>}, {transform_indices = @transform_3, window_bounds = array<i64: 8, 128>}]} {
    %c0 = arith.constant 0 : index
    %c0_0 = arith.constant 0 : index
    %0 = vector.load %arg1[%c0, %c0_0] : memref<8x1024xbf16, #tpu.memory_space<vmem>>, vector<8x1024xbf16>
    %c0_1 = arith.constant 0 : index
    %c0_2 = arith.constant 0 : index
    %1 = vector.load %arg2[%c0_1, %c0_2] : memref<1024x128xbf16, #tpu.memory_space<vmem>>, vector<1024x128xbf16>
    %cst = arith.constant dense<0.000000e+00> : vector<8x128xf32>
    %2 = tpu.matmul %0, %1, %cst {dimension_numbers = #tpu.dot_dimension_numbers<[1], [0], [0], [1], [0, 0, 1, 1], [], []>} : vector<8x1024xbf16>, vector<1024x128xbf16>, vector<8x128xf32> -> vector<8x128xf32>
    %c0_3 = arith.constant 0 : index
    %c0_4 = arith.constant 0 : index
    %3 = vector.load %arg3[%c0_3, %c0_4] : memref<8x128xf32, #tpu.memory_space<vmem>>, vector<1x128xf32>
    %4 = vector.broadcast %3 : vector<1x128xf32> to vector<8x128xf32>
    %5 = arith.addf %2, %4 : vector<8x128xf32>
    %cst_5 = arith.constant 0.000000e+00 : f32
    %6 = vector.broadcast %cst_5 : f32 to vector<8x128xf32>
    %7 = arith.maximumf %5, %6 : vector<8x128xf32>
    %c1 = arith.constant 1 : index
    %c0_6 = arith.constant 0 : index
    %8 = vector.load %arg3[%c1, %c0_6] : memref<8x128xf32, #tpu.memory_space<vmem>>, vector<1x128xf32>
    %9 = vector.broadcast %8 : vector<1x128xf32> to vector<8x128xf32>
    %10 = arith.mulf %7, %9 : vector<8x128xf32>
    %c2 = arith.constant 2 : index
    %c0_7 = arith.constant 0 : index
    %11 = vector.load %arg3[%c2, %c0_7] : memref<8x128xf32, #tpu.memory_space<vmem>>, vector<1x128xf32>
    %12 = vector.broadcast %11 : vector<1x128xf32> to vector<8x128xf32>
    %13 = arith.addf %10, %12 : vector<8x128xf32>
    %c0_8 = arith.constant 0 : index
    %c0_9 = arith.constant 0 : index
    %14 = vector.load %arg4[%c0_8, %c0_9] : memref<8x128xf32, #tpu.memory_space<vmem>>, vector<8x128xf32>
    tpu.vector_store %arg4[%c0_8, %c0_9], %13 {strides = array<i32>} : memref<8x128xf32, #tpu.memory_space<vmem>>, vector<8x128xf32>,
    return
  }
  func.func @transform_0(%arg0: i32) -> (i32, i32) {
    %c0_i32 = arith.constant 0 : i32
    %c0_i32_0 = arith.constant 0 : i32
    return %arg0, %c0_i32 : i32, i32
  }
  func.func @transform_1(%arg0: i32) -> (i32, i32) {
    %c0_i32 = arith.constant 0 : i32
    %c0_i32_0 = arith.constant 0 : i32
    %c0_i32_1 = arith.constant 0 : i32
    return %c0_i32, %c0_i32_0 : i32, i32
  }
  func.func @transform_2(%arg0: i32) -> (i32, i32) {
    %c0_i32 = arith.constant 0 : i32
    %c0_i32_0 = arith.constant 0 : i32
    %c0_i32_1 = arith.constant 0 : i32
    return %c0_i32, %c0_i32_0 : i32, i32
  }
  func.func @transform_3(%arg0: i32) -> (i32, i32) {
    %c0_i32 = arith.constant 0 : i32
    %c0_i32_0 = arith.constant 0 : i32
    return %arg0, %c0_i32 : i32, i32
  }
}

</mosaic_0001>

<bundles_post_ra>
// kernel: tpu_custom_call.1
= control target key start
LH: loop header
LB: loop body
LE: loop exit
PB: predicated region body
PF: predicated region fallthrough
CT: control target
= control target key end

     0   :  { %8 = vsyncpa [#allocation3], 0  ;;  %s1203_s0 = inlined_call_operand.hbm [shape: bf16[8,1024], index: 0, kind: input, shape index: {}]   ;;  %s1204_s1 = inlined_call_operand.hbm [shape: bf16[1024,128], index: 1, kind: input, shape index: {}]   ;;  %s1205_s2 = inlined_call_operand.hbm [shape: f32[8,128], index: 2, kind: input, shape index: {}]   ;;  %s1206_s3 = inlined_call_operand.hbm [shape: f32[8,128], index: 3, kind: output, shape index: {}]  }
   0x1   :  { %9 = vsyncpa [#allocation6], 0  ;;  %s26_s14 = sshll.u32 %s1204_s1, 4  ;;  %s27_s14 = int_to_ptr.hbm [resolvable:$true] %s26_s14 }
   0x2   :  { %10 = vsyncpa [#allocation4], 0  ;;  %s1165_s15 = smov [#allocation5]   ;;  %s16_s19 = sshll.u32 %s1203_s0, 4  ;;  %s17_s19 = int_to_ptr.hbm [resolvable:$true] %s16_s19 }
   0x3   :  { %s28_s16 = sshll.u32 %s1165_s15, 4  ;;  %s1166_s20 = smov 64   ;;  %s29_s16 = int_to_ptr.vmem [resolvable:$true] %s28_s16 }
   0x4   :  { %s1167_s21 = smov 4   ;;  %s1168_s22 = smov [#allocation2]  }
   0x5   :  { %34 = dma.hbm_to_vmem [thread:$0]  %s27_s14, 8192, %s29_s16, [#allocation6], %s1166_s20, %s1166_s20, %s1167_s21  }
   0x6   :  { %s18_s23 = sshll.u32 %s1168_s22, 4  ;;  %s40_s26 = sshll.u32 %s1205_s2, 4  ;;  %s19_s23 = int_to_ptr.vmem [resolvable:$true] %s18_s23  ;;  %s41_s26 = int_to_ptr.hbm [resolvable:$true] %s40_s26 }
   0x7   :  { %21 = dma.hbm_to_vmem [thread:$0]  %s17_s19, 512, %s19_s23, [#allocation3]  }
   0x8   :  { %s1169_s1 = smov [#allocation7]  }
   0x9   :  { %s42_s27 = sshll.u32 %s1169_s1, 4  ;;  %s43_s27 = int_to_ptr.vmem [resolvable:$true] %s42_s27 }
   0xa   :  { %45 = dma.hbm_to_vmem [thread:$0]  %s41_s26, 128, %s43_s27, [#allocation6]  }
   0xb   :  { %1159 = dma.done.wait [#allocation3], 512  }
   0xc   :  { %1160 = vsyncadd [#allocation3], 4294966784 }
   0xd   :  { %1161 = dma.done.wait [#allocation6], 8320  }
   0xe   :  { %1162 = vsyncadd [#allocation6], 4294958976  ;;  %v997_v0 = vld [vmem:[#allocation5 + $0x38] sm:$0xff]  ;;  %v996_v4 = vld [vmem:[#allocation5 + $0x30] sm:$0xff]  ;;  %s1170_s0 = smov [#allocation8]   ;;  %s723_s30 = sshll.u32 %s1206_s3, 4  ;;  %s724_s30 = int_to_ptr.hbm [resolvable:$true] %s723_s30 }
   0xf   :  { %v1005_v1 = vld [vmem:[#allocation5 + $0x78] sm:$0xff]  ;;  %604 = vmatpush.bf16.msra.mxu0 %v997_v0  ;;  %v1004_v5 = vld [vmem:[#allocation5 + $0x70] sm:$0xff]  ;;  %v995_v8 = vld [vmem:[#allocation5 + $0x28] sm:$0xff]  ;;  %s721_s2 = sshll.u32 %s1170_s0, 4  ;;  %s722_s2 = int_to_ptr.vmem [resolvable:$true] %s721_s2 }
  0x10   :  { %v1013_v2 = vld [vmem:[#allocation5 + $0xb8] sm:$0xff]  ;;  %617 = vmatpush.bf16.msra.mxu1 %v1005_v1  ;;  %v1012_v6 = vld [vmem:[#allocation5 + $0xb0] sm:$0xff]  ;;  %v1003_v9 = vld [vmem:[#allocation5 + $0x68] sm:$0xff] }
  0x11   :  { %v1021_v3 = vld [vmem:[#allocation5 + $0xf8] sm:$0xff]  ;;  %630 = vmatpush.bf16.msra.mxu2 %v1013_v2  ;;  %v1020_v7 = vld [vmem:[#allocation5 + $0xf0] sm:$0xff]  ;;  %v1011_v10 = vld [vmem:[#allocation5 + $0xa8] sm:$0xff] }
  0x12   :  { %643 = vmatpush.bf16.msra.mxu3 %v1021_v3  ;;  %v1019_v11 = vld [vmem:[#allocation5 + $0xe8] sm:$0xff]  ;;  %v994_v12 = vld [vmem:[#allocation5 + $0x20] sm:$0xff]  ;;  %v993_v16 = vld [vmem:[#allocation5 + $0x18] sm:$0xff] }
  0x13   :  { %605 = vmatpush.bf16.msra.mxu0 %v996_v4  ;;  %v1002_v13 = vld [vmem:[#allocation5 + $0x60] sm:$0xff]  ;;  %v1001_v17 = vld [vmem:[#allocation5 + $0x58] sm:$0xff]  ;;  %v992_v20 = vld [vmem:[#allocation5 + $0x10] sm:$0xff] }
  0x14   :  { %618 = vmatpush.bf16.msra.mxu1 %v1004_v5  ;;  %v1010_v14 = vld [vmem:[#allocation5 + $0xa0] sm:$0xff]  ;;  %v1009_v18 = vld [vmem:[#allocation5 + $0x98] sm:$0xff]  ;;  %v1000_v21 = vld [vmem:[#allocation5 + $0x50] sm:$0xff] }
  0x15   :  { %631 = vmatpush.bf16.msra.mxu2 %v1012_v6  ;;  %v1018_v15 = vld [vmem:[#allocation5 + $0xe0] sm:$0xff]  ;;  %v1017_v19 = vld [vmem:[#allocation5 + $0xd8] sm:$0xff]  ;;  %v1008_v22 = vld [vmem:[#allocation5 + $0x90] sm:$0xff] }
  0x16   :  { %644 = vmatpush.bf16.msra.mxu3 %v1020_v7  ;;  %v1016_v23 = vld [vmem:[#allocation5 + $0xd0] sm:$0xff]  ;;  %v991_v24 = vld [vmem:[#allocation5 + $0x8] sm:$0xff]  ;;  %v58_v29 = vld [vmem:[#allocation2] sm:$0xff] }
  0x17   :  { %606 = vmatpush.bf16.msra.mxu0 %v995_v8  ;;  %v999_v25 = vld [vmem:[#allocation5 + $0x48] sm:$0xff]  ;;  %v990_v30 = vld [vmem:[#allocation5] sm:$0xff]  ;;  %v196_v33 = vunpack.c.l.b16 %v58_v29  ;;  %v197_v37 = vunpack.c.h.b16 %v58_v29  ;;  %v1029_v38 = vld [vmem:[#allocation5 + $0x138] sm:$0xff] }
  0x18   :  { %619 = vmatpush.bf16.msra.mxu1 %v1003_v9  ;;  %v1007_v26 = vld [vmem:[#allocation5 + $0x88] sm:$0xff]  ;;  %v998_v31 = vld [vmem:[#allocation5 + $0x40] sm:$0xff]  ;;  %v1037_v39 = vld [vmem:[#allocation5 + $0x178] sm:$0xff] }
  0x19   :  { %632 = vmatpush.bf16.msra.mxu2 %v1011_v10  ;;  %v1015_v27 = vld [vmem:[#allocation5 + $0xc8] sm:$0xff]  ;;  %v1006_v34 = vld [vmem:[#allocation5 + $0x80] sm:$0xff]  ;;  %v1045_v40 = vld [vmem:[#allocation5 + $0x1b8] sm:$0xff]  ;;  %v204_v43 = vpack.c.b16 %v196_v33, %v196_v33  ;;  %v205_v45 = vpack.c.b16 %v197_v37, %v197_v37 }
  0x1a   :  { %645 = vmatpush.bf16.msra.mxu3 %v1019_v11  ;;  %v59_v28 = vld [vmem:[#allocation2 + $0x8] sm:$0xff]  ;;  %v1014_v35 = vld [vmem:[#allocation5 + $0xc0] sm:$0xff]  ;;  %v1053_v41 = vld [vmem:[#allocation5 + $0x1f8] sm:$0xff] }
  0x1b   :  { %607 = vmatpush.bf16.msra.mxu0 %v994_v12  ;;  %v198_v32 = vunpack.c.l.b16 %v59_v28  ;;  %v199_v36 = vunpack.c.h.b16 %v59_v28  ;;  %v1028_v46 = vld [vmem:[#allocation5 + $0x130] sm:$0xff]  ;;  %v1027_v50 = vld [vmem:[#allocation5 + $0x128] sm:$0xff]  ;;  %v1026_v54 = vld [vmem:[#allocation5 + $0x120] sm:$0xff] }
  0x1c   :  { %620 = vmatpush.bf16.msra.mxu1 %v1002_v13  ;;  %v1036_v47 = vld [vmem:[#allocation5 + $0x170] sm:$0xff]  ;;  %v1035_v51 = vld [vmem:[#allocation5 + $0x168] sm:$0xff]  ;;  %v1034_v55 = vld [vmem:[#allocation5 + $0x160] sm:$0xff] }
  0x1d   :  { %633 = vmatpush.bf16.msra.mxu2 %v1010_v14  ;;  %v206_v42 = vpack.c.b16 %v198_v32, %v198_v32  ;;  %v207_v44 = vpack.c.b16 %v199_v36, %v199_v36  ;;  %v1044_v48 = vld [vmem:[#allocation5 + $0x1b0] sm:$0xff]  ;;  %v1043_v52 = vld [vmem:[#allocation5 + $0x1a8] sm:$0xff]  ;;  %v1042_v56 = vld [vmem:[#allocation5 + $0x1a0] sm:$0xff] }
  0x1e   :  { %646 = vmatpush.bf16.msra.mxu3 %v1018_v15  ;;  %v1052_v49 = vld [vmem:[#allocation5 + $0x1f0] sm:$0xff]  ;;  %v1051_v53 = vld [vmem:[#allocation5 + $0x1e8] sm:$0xff]  ;;  %v1050_v57 = vld [vmem:[#allocation5 + $0x1e0] sm:$0xff] }
  0x1f   :  { %608 = vmatpush.bf16.msra.mxu0 %v993_v16  ;;  %v1025_v58 = vld [vmem:[#allocation5 + $0x118] sm:$0xff]  ;;  %v1024_v62 = vld [vmem:[#allocation5 + $0x110] sm:$0xff]  ;;  %v1023_v2 = vld [vmem:[#allocation5 + $0x108] sm:$0xff] }
  0x20   :  { %621 = vmatpush.bf16.msra.mxu1 %v1001_v17  ;;  %v1033_v59 = vld [vmem:[#allocation5 + $0x158] sm:$0xff]  ;;  %v1032_v63 = vld [vmem:[#allocation5 + $0x150] sm:$0xff]  ;;  %v1031_v3 = vld [vmem:[#allocation5 + $0x148] sm:$0xff] }
  0x21   :  { %634 = vmatpush.bf16.msra.mxu2 %v1009_v18  ;;  %v1041_v60 = vld [vmem:[#allocation5 + $0x198] sm:$0xff]  ;;  %v1040_v0 = vld [vmem:[#allocation5 + $0x190] sm:$0xff]  ;;  %v1039_v5 = vld [vmem:[#allocation5 + $0x188] sm:$0xff] }
  0x22   :  { %647 = vmatpush.bf16.msra.mxu3 %v1017_v19  ;;  %v1049_v61 = vld [vmem:[#allocation5 + $0x1d8] sm:$0xff]  ;;  %v1048_v1 = vld [vmem:[#allocation5 + $0x1d0] sm:$0xff]  ;;  %v1047_v6 = vld [vmem:[#allocation5 + $0x1c8] sm:$0xff] }
  0x23   :  { %609 = vmatpush.bf16.msra.mxu0 %v992_v20  ;;  %v60_v4 = vld [vmem:[#allocation2 + $0x10] sm:$0xff]  ;;  %v61_v7 = vld [vmem:[#allocation2 + $0x18] sm:$0xff]  ;;  %v1022_v10 = vld [vmem:[#allocation5 + $0x100] sm:$0xff] }
  0x24   :  { %622 = vmatpush.bf16.msra.mxu1 %v1000_v21  ;;  %v200_v8 = vunpack.c.l.b16 %v60_v4  ;;  %v201_v9 = vunpack.c.h.b16 %v60_v4  ;;  %v1030_v11 = vld [vmem:[#allocation5 + $0x140] sm:$0xff]  ;;  %v202_v12 = vunpack.c.l.b16 %v61_v7  ;;  %v203_v13 = vunpack.c.h.b16 %v61_v7 }
  0x25   :  { %635 = vmatpush.bf16.msra.mxu2 %v1008_v22  ;;  %v1038_v14 = vld [vmem:[#allocation5 + $0x180] sm:$0xff] }
  0x26   :  { %648 = vmatpush.bf16.msra.mxu3 %v1016_v23  ;;  %v1046_v15 = vld [vmem:[#allocation5 + $0x1c0] sm:$0xff]  ;;  %v208_v16 = vpack.c.b16 %v200_v8, %v200_v8  ;;  %v209_v17 = vpack.c.b16 %v201_v9, %v201_v9  ;;  %v210_v18 = vpack.c.b16 %v202_v12, %v202_v12  ;;  %v211_v19 = vpack.c.b16 %v203_v13, %v203_v13 }
  0x27   :  { %610 = vmatpush.bf16.msra.mxu0 %v991_v24 }
  0x28   :  { %623 = vmatpush.bf16.msra.mxu1 %v999_v25 }
  0x29   :  { %636 = vmatpush.bf16.msra.mxu2 %v1007_v26  ;;  %v1060_v26 = vld [vmem:[#allocation7] ss:$0 sm:$0xff] }
  0x2a   :  { %649 = vmatpush.bf16.msra.mxu3 %v1015_v27 }
  0x2b   :  { %611 = vmatpush.bf16.msra.mxu0 %v990_v30 }
  0x2c   :  { %624 = vmatpush.bf16.msra.mxu1 %v998_v31 }
  0x2d   :  { %637 = vmatpush.bf16.msra.mxu2 %v1006_v34 }
  0x2e   :  { %650 = vmatpush.bf16.msra.mxu3 %v1014_v35  ;;  %612 = vmatmul.bf16.vlgmr.msra.gmra.mxu0 %v204_v43  ;;  %v1061_v43 = vld [vmem:[#allocation7 + $0x1] ss:$0 sm:$0xff] }
  0x2f   :  { %656 = vmatpush.bf16.msrb.mxu0 %v1029_v38  ;;  %625 = vmatmul.bf16.vlgmr.msra.gmra.mxu1 %v205_v45  ;;  %v1062_v45 = vld [vmem:[#allocation7 + $0x2] ss:$0 sm:$0xff] }
  0x30   :  { %669 = vmatpush.bf16.msrb.mxu1 %v1037_v39  ;;  %638 = vmatmul.bf16.vlgmr.msra.gmra.mxu2 %v206_v42 }
  0x31   :  { %682 = vmatpush.bf16.msrb.mxu2 %v1045_v40  ;;  %651 = vmatmul.bf16.vlgmr.msra.gmra.mxu3 %v207_v44 }
  0x32   :  { %695 = vmatpush.bf16.msrb.mxu3 %v1053_v41 }
  0x33   :  { %657 = vmatpush.bf16.msrb.mxu0 %v1028_v46 }
  0x34   :  { %670 = vmatpush.bf16.msrb.mxu1 %v1036_v47 }
  0x35   :  { %683 = vmatpush.bf16.msrb.mxu2 %v1044_v48 }
  0x36   :  { %696 = vmatpush.bf16.msrb.mxu3 %v1052_v49 }
  0x37   :  { %658 = vmatpush.bf16.msrb.mxu0 %v1027_v50 }
  0x38   :  { %671 = vmatpush.bf16.msrb.mxu1 %v1035_v51 }
  0x39   :  { %684 = vmatpush.bf16.msrb.mxu2 %v1043_v52 }
  0x3a   :  { %697 = vmatpush.bf16.msrb.mxu3 %v1051_v53 }
  0x3b   :  { %659 = vmatpush.bf16.msrb.mxu0 %v1026_v54 }
  0x3c   :  { %672 = vmatpush.bf16.msrb.mxu1 %v1034_v55 }
  0x3d   :  { %685 = vmatpush.bf16.msrb.mxu2 %v1042_v56 }
  0x3e   :  { %698 = vmatpush.bf16.msrb.mxu3 %v1050_v57 }
  0x3f   :  { %660 = vmatpush.bf16.msrb.mxu0 %v1025_v58 }
  0x40   :  { %673 = vmatpush.bf16.msrb.mxu1 %v1033_v59 }
  0x41   :  { %686 = vmatpush.bf16.msrb.mxu2 %v1041_v60 }
  0x42   :  { %699 = vmatpush.bf16.msrb.mxu3 %v1049_v61 }
  0x43   :  { %661 = vmatpush.bf16.msrb.mxu0 %v1024_v62 }
  0x44   :  { %674 = vmatpush.bf16.msrb.mxu1 %v1032_v63 }
  0x45   :  { %687 = vmatpush.bf16.msrb.mxu2 %v1040_v0 }
  0x46   :  { %700 = vmatpush.bf16.msrb.mxu3 %v1048_v1 }
  0x47   :  { %662 = vmatpush.bf16.msrb.mxu0 %v1023_v2 }
  0x48   :  { %675 = vmatpush.bf16.msrb.mxu1 %v1031_v3 }
  0x49   :  { %688 = vmatpush.bf16.msrb.mxu2 %v1039_v5 }
  0x4a   :  { %701 = vmatpush.bf16.msrb.mxu3 %v1047_v6 }
  0x4b   :  { %663 = vmatpush.bf16.msrb.mxu0 %v1022_v10 }
  0x4c   :  { %676 = vmatpush.bf16.msrb.mxu1 %v1030_v11 }
  0x4d   :  { %689 = vmatpush.bf16.msrb.mxu2 %v1038_v14 }
  0x4e   :  { %702 = vmatpush.bf16.msrb.mxu3 %v1046_v15  ;;  %664 = vmatmul.bf16.vlgmr.msrb.gmra.mxu0 %v208_v16 }
  0x4f   :  { %677 = vmatmul.bf16.vlgmr.msrb.gmra.mxu1 %v209_v17 }
  0x50   :  { %690 = vmatmul.bf16.vlgmr.msrb.gmra.mxu2 %v210_v18 }
  0x51   :  { %703 = vmatmul.bf16.vlgmr.msrb.gmra.mxu3 %v211_v19 }
  0xab   :  { %v613_v20 = vpop.f32.mrf.mxu0 }
  0xac   :  { %v626_v21 = vpop.f32.mrf.mxu1  ;;  %v614_v29 = vadd.f32 %v1060_v26, %v613_v20 }
  0xae   :  { %v627_v30 = vadd.f32 %v626_v21, %v614_v29 }
  0xb3   :  { %v639_v22 = vpop.f32.mrf.mxu2  ;;  %v615_v24 = vpop.f32.mrf.mxu0 }
  0xb4   :  { %v652_v23 = vpop.f32.mrf.mxu3  ;;  %v628_v25 = vpop.f32.mrf.mxu1  ;;  %v640_v31 = vadd.f32 %v639_v22, %v627_v30 }
  0xb6   :  { %v653_v32 = vadd.f32 %v652_v23, %v640_v31 }
  0xbb   :  { %v641_v27 = vpop.f32.mrf.mxu2 }
  0xbc   :  { %v654_v28 = vpop.f32.mrf.mxu3 }
  0xcb   :  { %v665_v33 = vpop.f32.mrf.mxu0 }
  0xcc   :  { %v678_v34 = vpop.f32.mrf.mxu1  ;;  %v666_v35 = vadd.f32 %v665_v33, %v653_v32 }
  0xce   :  { %v679_v36 = vadd.f32 %v678_v34, %v666_v35 }
  0xd3   :  { %v691_v37 = vpop.f32.mrf.mxu2  ;;  %v667_v40 = vpop.f32.mrf.mxu0 }
  0xd4   :  { %v704_v38 = vpop.f32.mrf.mxu3  ;;  %v692_v39 = vadd.f32 %v691_v37, %v679_v36  ;;  %v680_v41 = vpop.f32.mrf.mxu1 }
  0xd6   :  { %v705_v42 = vadd.f32 %v704_v38, %v692_v39 }
  0xd8   :  { %v708_v44 = vmax.f32 %v705_v42, 0.0 }
  0xda   :  { %v711_v46 = vmul.f32 %v1061_v43, %v708_v44 }
  0xdb   :  { %v693_v47 = vpop.f32.mrf.mxu2 }
  0xdc   :  { %v706_v48 = vpop.f32.mrf.mxu3  ;;  %v714_v49 = vadd.f32 %v1062_v45, %v711_v46 }
  0xde   :  { %715 = vst [vmem:[#allocation8] sm:$0xff] %v714_v49 }
  0xdf   :  { %726 = dma.vmem_to_hbm [thread:$0]  %s722_s2, 128, %s724_s30, [#allocation4]  }
  0xe0   :  { %1163 = dma.done.wait [#allocation4], 128  }
  0xe1   :  { %1164 = vsyncadd [#allocation4], 4294967168 }
  0xe2   :  { %731 = vsyncpa [#allocation3], 1 }
  0xe3   :  { %732 = vsyncpa [#allocation6], 1 }
  0xe4   :  { %733 = vsyncpa [#allocation4], 1 }

</bundles_post_ra>
